<compile_context>
chip_gen: v5e
topology: v5e:2x2
jax: 0.10.0
libtpu: 0.0.40
codegen_flags: <defaults>
</compile_context>

<pallas_src>
import functools

import jax
import jax.numpy as jnp
from jax.experimental import pallas as pl
from jax.experimental.pallas import tpu as pltpu


def _round_up(x, m):
    return (x + m - 1) // m * m


def _stem_kernel(feat_ref, ids_ref, w12_ref, e2_ref, out_ref,
                 *, num_embeddings, K, V, v_chunk, tm):
    # x @ (W1 @ W2)   -- proj_features and proj_out fused into one matmul
    x = feat_ref[...]                                     # (tm, C_in) f32
    acc = jnp.dot(x, w12_ref[...], preferred_element_type=jnp.float32)

    # embeddables: replace -1 with num_embeddings (extra embedding row)
    ids = ids_ref[...]                                    # (tm, K) int32
    ids = jnp.where(ids == -1, num_embeddings, ids)

    # mean_k emb[ids_k] @ W2 == (sum_k one_hot(ids_k)) @ (emb @ W2 / K)
    # Build integer counts per vocab chunk and contract on the MXU.
    for v0 in range(0, V, v_chunk):                       # static unrolled loop
        vc = min(v_chunk, V - v0)
        iota_v = v0 + jax.lax.broadcasted_iota(jnp.int32, (tm, vc), 1)
        cnt = jnp.zeros((tm, vc), jnp.int32)
        for k in range(K):                                # K is small & static
            cnt = cnt + (ids[:, k:k + 1] == iota_v).astype(jnp.int32)
        if v0 == 0 and vc == V:
            e2_chunk = e2_ref[...]
        else:
            e2_chunk = e2_ref[pl.ds(v0, vc), :]
        acc = acc + jnp.dot(cnt.astype(jnp.float32), e2_chunk,
                            preferred_element_type=jnp.float32)

    # Lane-dense (C_out padded to multiple of 128) unmasked store.
    out_ref[...] = acc


def stem_forward(features, embeddables, w1, emb_table, w2,
                 *, num_embeddings, tm=512, v_chunk=512):
    """features: [B, S, C_in] f32, embeddables: [B, S, K] int32."""
    B, S, C_in = features.shape
    K = embeddables.shape[-1]
    V, H = emb_table.shape
    C_out = w2.shape[-1]
    M = B * S

    # ---- wrapper-side algebraic fusion (exact) --------------------------
    w12 = (w1 @ w2).astype(jnp.float32)                   # (C_in, C_out)
    e2 = ((emb_table @ w2) * (1.0 / K)).astype(jnp.float32)  # (V, C_out)

    # Lane-dense output: pad C_out up to a multiple of 128 lanes with zeros.
    LANES = 128
    C_out_p = _round_up(C_out, LANES)
    if C_out_p != C_out:
        w12 = jnp.pad(w12, ((0, 0), (0, C_out_p - C_out)))
        e2 = jnp.pad(e2, ((0, 0), (0, C_out_p - C_out)))

    # Row tile: largest multiple of 8 up to `tm` that is useful for this M;
    # pad M so the grid divides evenly (remainder handled by padding+slice).
    tm_eff = min(tm, _round_up(M, 8))
    M_pad = _round_up(M, tm_eff)

    feat2d = features.reshape(M, C_in).astype(jnp.float32)
    ids2d = embeddables.reshape(M, K).astype(jnp.int32)
    if M_pad != M:
        feat2d = jnp.pad(feat2d, ((0, M_pad - M), (0, 0)))
        ids2d = jnp.pad(ids2d, ((0, M_pad - M), (0, 0)),
                        constant_values=num_embeddings)

    kernel = functools.partial(
        _stem_kernel, num_embeddings=num_embeddings, K=K, V=V,
        v_chunk=min(v_chunk, V), tm=tm_eff)

    out2d = pl.pallas_call(
        kernel,
        out_shape=jax.ShapeDtypeStruct((M_pad, C_out_p), jnp.float32),
        grid_spec=pltpu.PrefetchScalarGridSpec(
            num_scalar_prefetch=0,
            grid=(M_pad // tm_eff,),
            in_specs=[
                pl.BlockSpec((tm_eff, C_in), lambda i: (i, 0)),
                pl.BlockSpec((tm_eff, K), lambda i: (i, 0)),
                # Fused weight/table blocks are constant across the grid and
                # tiny (<= a few hundred KiB), so double-buffering is cheap.
                pl.BlockSpec((C_in, C_out_p), lambda i: (0, 0)),
                pl.BlockSpec((V, C_out_p), lambda i: (0, 0)),
            ],
            out_specs=pl.BlockSpec((tm_eff, C_out_p), lambda i: (i, 0)),
        ),
        compiler_params=pltpu.CompilerParams(
            dimension_semantics=("parallel",)),
    )(feat2d, ids2d, w12, e2)

    return out2d[:M, :C_out].reshape(B, S, C_out)


def stem_reference(features, embeddables, w1, emb_table, w2, *, num_embeddings):
    out = features @ w1
    ids = jnp.where(embeddables == -1, num_embeddings, embeddables)
    out_emb = emb_table[ids]                 # [B, S, K, H]
    out_emb = jnp.mean(out_emb, axis=-2)     # mean over K (dim > 3 case)
    out = out + out_emb
    return out @ w2


if __name__ == "__main__":
    # Module config
    in_channels, out_channels = 4, 16
    num_embeddings, hidden_size = 10, 32
    B, S, K = 2, 8, 3

    key = jax.random.PRNGKey(0)
    k_feat, k_ids, k_w1, k_emb, k_w2 = jax.random.split(key, 5)

    features = jax.random.normal(k_feat, (B, S, in_channels), jnp.float32)
    # include some -1 entries to exercise the padding-index path
    embeddables = jax.random.randint(k_ids, (B, S, K), -1, num_embeddings,
                                     dtype=jnp.int32)

    # Linear weights stored as (in, out) so x @ W matches torch's x @ weight.T.
    w1 = jax.random.normal(k_w1, (in_channels, hidden_size), jnp.float32) * 0.1
    emb_table = jax.random.normal(
        k_emb, (num_embeddings + 1, hidden_size), jnp.float32) * 0.1
    w2 = jax.random.normal(k_w2, (hidden_size, out_channels), jnp.float32) * 0.1

    out = stem_forward(features, embeddables, w1, emb_table, w2,
                       num_embeddings=num_embeddings)
    out = jax.block_until_ready(out)

    ref = stem_reference(features, embeddables, w1, emb_table, w2,
                         num_embeddings=num_embeddings)
    assert out.shape == (B, S, out_channels)
    assert jnp.allclose(out, ref, atol=1e-4, rtol=1e-4)

    print("KERNEL_OK")
</pallas_src>

<mosaic_0001>
module attributes {stable_mosaic.version = 11 : i64} {
  func.func @_stem_kernel(%arg0: i32, %arg1: memref<16x4xf32, #tpu.memory_space<vmem>>, %arg2: memref<16x3xi32, #tpu.memory_space<vmem>>, %arg3: memref<4x128xf32, #tpu.memory_space<vmem>>, %arg4: memref<11x128xf32, #tpu.memory_space<vmem>>, %arg5: memref<16x128xf32, #tpu.memory_space<vmem>>) attributes {dimension_semantics = [#tpu.dimension_semantics<parallel>], iteration_bounds = array<i64: 1>, scalar_prefetch = 0 : i64, scratch_operands = 0 : i64, tpu.core_type = #tpu.core_type<tc>, window_params = [{transform_indices = @transform_0, window_bounds = array<i64: 16, 4>}, {transform_indices = @transform_1, window_bounds = array<i64: 16, 3>}, {pipeline_mode = #tpu.pipeline_mode<synchronous>, transform_indices = @transform_2, window_bounds = array<i64: 4, 128>}, {pipeline_mode = #tpu.pipeline_mode<synchronous>, transform_indices = @transform_3, window_bounds = array<i64: 11, 128>}, {transform_indices = @transform_4, window_bounds = array<i64: 16, 128>}]} {
    %c0 = arith.constant 0 : index
    %c0_0 = arith.constant 0 : index
    %0 = vector.load %arg1[%c0, %c0_0] : memref<16x4xf32, #tpu.memory_space<vmem>>, vector<16x4xf32>
    %c0_1 = arith.constant 0 : index
    %c0_2 = arith.constant 0 : index
    %1 = vector.load %arg3[%c0_1, %c0_2] : memref<4x128xf32, #tpu.memory_space<vmem>>, vector<4x128xf32>
    %cst = arith.constant dense<0.000000e+00> : vector<16x128xf32>
    %2 = tpu.matmul %0, %1, %cst {dimension_numbers = #tpu.dot_dimension_numbers<[1], [0], [0], [1], [0, 0, 1, 1], [], []>} : vector<16x4xf32>, vector<4x128xf32>, vector<16x128xf32> -> vector<16x128xf32>
    %c0_3 = arith.constant 0 : index
    %c0_4 = arith.constant 0 : index
    %3 = vector.load %arg2[%c0_3, %c0_4] : memref<16x3xi32, #tpu.memory_space<vmem>>, vector<16x3xi32>
    %c-1_i32 = arith.constant -1 : i32
    %4 = vector.broadcast %c-1_i32 : i32 to vector<16x3xi32>
    %5 = arith.cmpi eq, %3, %4 : vector<16x3xi32>
    %c10_i32 = arith.constant 10 : i32
    %6 = vector.broadcast %c10_i32 : i32 to vector<16x3xi32>
    %7 = arith.select %5, %6, %3 : vector<16x3xi1>, vector<16x3xi32>
    %8 = tpu.iota {dimensions = array<i32: 1>} : vector<16x11xi32>
    %c0_i32 = arith.constant 0 : i32
    %9 = vector.broadcast %c0_i32 : i32 to vector<16x11xi32>
    %10 = arith.addi %9, %8 : vector<16x11xi32>
    %c0_i32_5 = arith.constant 0 : i32
    %11 = vector.broadcast %c0_i32_5 : i32 to vector<16x11xi32>
    %12 = vector.extract_strided_slice %7 {offsets = [0, 0], sizes = [16, 1], strides = [1, 1]} : vector<16x3xi32> to vector<16x1xi32>
    %13 = vector.broadcast %12 : vector<16x1xi32> to vector<16x11xi32>
    %14 = arith.cmpi eq, %13, %10 : vector<16x11xi32>
    %15 = arith.extui %14 : vector<16x11xi1> to vector<16x11xi32>
    %16 = arith.addi %11, %15 : vector<16x11xi32>
    %17 = vector.extract_strided_slice %7 {offsets = [0, 1], sizes = [16, 1], strides = [1, 1]} : vector<16x3xi32> to vector<16x1xi32>
    %18 = vector.broadcast %17 : vector<16x1xi32> to vector<16x11xi32>
    %19 = arith.cmpi eq, %18, %10 : vector<16x11xi32>
    %20 = arith.extui %19 : vector<16x11xi1> to vector<16x11xi32>
    %21 = arith.addi %16, %20 : vector<16x11xi32>
    %22 = vector.extract_strided_slice %7 {offsets = [0, 2], sizes = [16, 1], strides = [1, 1]} : vector<16x3xi32> to vector<16x1xi32>
    %23 = vector.broadcast %22 : vector<16x1xi32> to vector<16x11xi32>
    %24 = arith.cmpi eq, %23, %10 : vector<16x11xi32>
    %25 = arith.extui %24 : vector<16x11xi1> to vector<16x11xi32>
    %26 = arith.addi %21, %25 : vector<16x11xi32>
    %c0_6 = arith.constant 0 : index
    %c0_7 = arith.constant 0 : index
    %27 = vector.load %arg4[%c0_6, %c0_7] : memref<11x128xf32, #tpu.memory_space<vmem>>, vector<11x128xf32>
    %28 = arith.sitofp %26 : vector<16x11xi32> to vector<16x11xf32>
    %cst_8 = arith.constant dense<0.000000e+00> : vector<16x128xf32>
    %29 = tpu.matmul %28, %27, %cst_8 {dimension_numbers = #tpu.dot_dimension_numbers<[1], [0], [0], [1], [0, 0, 1, 1], [], []>} : vector<16x11xf32>, vector<11x128xf32>, vector<16x128xf32> -> vector<16x128xf32>
    %30 = arith.addf %2, %29 : vector<16x128xf32>
    %c0_9 = arith.constant 0 : index
    %c0_10 = arith.constant 0 : index
    %31 = vector.load %arg5[%c0_9, %c0_10] : memref<16x128xf32, #tpu.memory_space<vmem>>, vector<16x128xf32>
    tpu.vector_store %arg5[%c0_9, %c0_10], %30 {strides = array<i32>} : memref<16x128xf32, #tpu.memory_space<vmem>>, vector<16x128xf32>,
    return
  }
  func.func @transform_0(%arg0: i32) -> (i32, i32) {
    %c0_i32 = arith.constant 0 : i32
    %c0_i32_0 = arith.constant 0 : i32
    return %arg0, %c0_i32 : i32, i32
  }
  func.func @transform_1(%arg0: i32) -> (i32, i32) {
    %c0_i32 = arith.constant 0 : i32
    %c0_i32_0 = arith.constant 0 : i32
    return %arg0, %c0_i32 : i32, i32
  }
  func.func @transform_2(%arg0: i32) -> (i32, i32) {
    %c0_i32 = arith.constant 0 : i32
    %c0_i32_0 = arith.constant 0 : i32
    %c0_i32_1 = arith.constant 0 : i32
    return %c0_i32, %c0_i32_0 : i32, i32
  }
  func.func @transform_3(%arg0: i32) -> (i32, i32) {
    %c0_i32 = arith.constant 0 : i32
    %c0_i32_0 = arith.constant 0 : i32
    %c0_i32_1 = arith.constant 0 : i32
    return %c0_i32, %c0_i32_0 : i32, i32
  }
  func.func @transform_4(%arg0: i32) -> (i32, i32) {
    %c0_i32 = arith.constant 0 : i32
    %c0_i32_0 = arith.constant 0 : i32
    return %arg0, %c0_i32 : i32, i32
  }
}

</mosaic_0001>

<bundles_post_ra>
// kernel: tpu_custom_call.1
= control target key start
LH: loop header
LB: loop body
LE: loop exit
PB: predicated region body
PF: predicated region fallthrough
CT: control target
= control target key end

     0   :  { %v203_v2 = vmov 2   ;;  %v204_v3 = vmov 0   ;;  %s258_s0 = inlined_call_operand.vmem [shape: f32[16,4], index: 0, kind: input, shape index: {}]   ;;  %s259_s1 = inlined_call_operand.vmem [shape: s32[16,3], index: 1, kind: input, shape index: {}]   ;;  %s260_s2 = inlined_call_operand.vmem [shape: f32[4,128], index: 2, kind: input, shape index: {}]   ;;  %s261_s3 = inlined_call_operand.vmem [shape: f32[11,128], index: 3, kind: input, shape index: {}]   ;;  %s262_s4 = inlined_call_operand.hbm [shape: f32[16,128], index: 4, kind: output, shape index: {}]  }
   0x1   :  { %v22_v0 = vld [vmem:[%s259_s1 + $0x8] sm:$0xff]  ;;  %v21_v1 = vld [vmem:[%s259_s1] sm:$0xff]  ;;  %172 = vset.pattern.permute.xlu1 %v203_v2  ;;  %170 = vset.pattern.permute.xlu0 %v204_v3 }
   0x2   :  { %vm24_vm0 = vcmp.eq.s32.totalorder %v22_v0, 4294967295  ;;  %vm23_vm1 = vcmp.eq.s32.totalorder %v21_v1, 4294967295 }
   0x3   :  { %9 = vsyncpa [#allocation3], 0  ;;  %v26_v4 = vsel %vm24_vm0, 10, %v22_v0  ;;  %v205_v5 = vmov 1   ;;  %v25_v6 = vsel %vm23_vm1, 10, %v21_v1  ;;  %vm74_vm2 = vcmask 1042432  }
   0x4   :  { %174 = vset.pattern.permute.xlu2 %v205_v5  ;;  %55 = vperm.xlu1 %172, %v26_v4   ;;  %v64_v7 = vld [vmem:[%s261_s3 + $0x8] sm:$0x7]  ;;  %v63_v8 = vld [vmem:[%s261_s3] sm:$0xff]  ;;  %vm108_vm3 = vcmask 1043456   ;;  %vm101_vm4 = vcmask 31744   ;;  %v27_v13 = vlaneseq  ;;  %vm67_vm11 = vcmask 89088  }
   0x5   :  { %33 = vperm.xlu0 %170, %v26_v4   ;;  %40 = vperm.xlu2 %174, %v25_v6   ;;  %v20_v9 = vld [vmem:[%s260_s2] sm:$0xf]  ;;  %v19_v11 = vld [vmem:[%s258_s0 + $0x8] sm:$0xff]  ;;  %s143_s29 = sshll.u32 %s262_s4, 4  ;;  %s207_s30 = smov 128   ;;  %s144_s29 = int_to_ptr.hbm [resolvable:$true] %s143_s29 }
   0x6   :  { %155 = vmatpush.msk.msra.mxu0 %vm74_vm2, %v64_v7  ;;  %161 = vmatpush.msk.msra.mxu2 %vm74_vm2, %v64_v7  ;;  %v18_v10 = vld [vmem:[%s258_s0] sm:$0xff]  ;;  %v28_v16 = vand.u32 127, %v27_v13  ;;  %s206_s0 = smov [#allocation2]   ;;  %s208_s5 = smov 8  }
   0x7   :  { %158 = vmatpush.msk.msra.mxu1 %vm108_vm3, %v20_v9  ;;  %163 = vmatpush.msk.msra.mxu3 %vm108_vm3, %v20_v9  ;;  %s141_s2 = sshll.u32 %s206_s0, 4  ;;  %s142_s2 = int_to_ptr.vmem [resolvable:$true] %s141_s2 }
   0x8   :  { %93 = vmatpush.msra.mxu0 %v63_v8  ;;  %162 = vmatpush.msra.mxu2 %v63_v8 }
   0x9   :  { %159 = vmatmul.msk.f32.vlgmr.msra.gmra.mxu1 %vm101_vm4, %v18_v10  ;;  %160 = vmatmul.msk.f32.vlgmr.msra.gmra.mxu3 %vm101_vm4, %v19_v11 }
   0xc   :  { %173 = vset.pattern.permute.xlu1 %v204_v3 }
   0xd   :  { %171 = vset.pattern.permute.xlu0 %v205_v5  ;;  %30 = vperm.xlu1 %173, %v25_v6  }
   0xe   :  { %43 = vperm.xlu0 %171, %v26_v4   ;;  %175 = vset.pattern.permute.xlu2 %v203_v2 }
   0xf   :  { %52 = vperm.xlu2 %175, %v25_v6  }
  0x16   :  { %176 = vset.pattern.permute.xlu0 %v203_v2 }
  0x5f   :  { %v41_v12 = vpop.permute.xlu2 %40 }
  0x60   :  { %vm45_vm5 = vcmp.eq.s32.totalorder %v41_v12, %v28_v16 }
  0x61   :  { %v47_v18 = vsel %vm45_vm5, 1, %v204_v3 }
  0x69   :  { %v53_v17 = vpop.permute.xlu2 %52 }
  0x6a   :  { %vm57_vm7 = vcmp.eq.s32.totalorder %v53_v17, %v28_v16 }
  0x6b   :  { %v59_v24 = vsel %vm57_vm7, 1, %v204_v3 }
  0x76   :  { %v56_v15 = vpop.permute.xlu1 %55 }
  0x77   :  { %v34_v14 = vpop.permute.xlu0 %33  ;;  %vm58_vm8 = vcmp.eq.s32.totalorder %v56_v15, %v28_v16 }
  0x78   :  { %vm36_vm6 = vcmp.eq.s32.totalorder %v34_v14, %v28_v16  ;;  %v60_v27 = vsel %vm58_vm8, 1, %v204_v3 }
  0x79   :  { %v38_v21 = vsel %vm36_vm6, 1, %v204_v3 }
  0x7f   :  { %v31_v20 = vpop.permute.xlu1 %30 }
  0x80   :  { %v44_v19 = vpop.permute.xlu0 %43  ;;  %vm35_vm10 = vcmp.eq.s32.totalorder %v31_v20, %v28_v16 }
  0x81   :  { %vm46_vm9 = vcmp.eq.s32.totalorder %v44_v19, %v28_v16  ;;  %v37_v23 = vsel %vm35_vm10, 1, %v204_v3 }
  0x82   :  { %v48_v22 = vsel %vm46_vm9, 1, %v204_v3  ;;  %v49_v26 = vadd.s32 %v47_v18, %v37_v23 }
  0x83   :  { %v50_v25 = vadd.s32 %v48_v22, %v38_v21 }
  0x84   :  { %v61_v28 = vadd.s32 %v59_v24, %v49_v26 }
  0x85   :  { %v62_v29 = vadd.s32 %v60_v27, %v50_v25 }
  0x86   :  { %v65_v30 = vcvt.s32.f32 %v61_v28  ;;  %v129_v32 = vpop.f32.mrf.mxu1 }
  0x87   :  { %v66_v31 = vcvt.s32.f32 %v62_v29 }
  0x88   :  { %156 = vmatmul.msk.f32.vlgmr.msra.gmra.mxu0 %vm67_vm11, %v65_v30 }
  0x89   :  { %157 = vmatmul.msk.f32.vlgmr.msra.gmra.mxu2 %vm67_vm11, %v66_v31 }
  0x8c   :  { %v132_v35 = vpop.f32.mrf.mxu3 }
 0x105   :  { %v95_v33 = vpop.f32.mrf.mxu0 }
 0x106   :  { %v130_v34 = vadd.f32 %v129_v32, %v95_v33 }
 0x108   :  { %135 = vst [vmem:[#allocation2] sm:$0xff] %v130_v34 }
 0x10c   :  { %v98_v36 = vpop.f32.mrf.mxu2 }
 0x10d   :  { %v133_v37 = vadd.f32 %v132_v35, %v98_v36 }
 0x10f   :  { %136 = vst [vmem:[#allocation2 + $0x8] sm:$0xff] %v133_v37 }
 0x110   :  { %149 = dma.vmem_to_hbm [thread:$0]  %s142_s2, 256, %s144_s29, [#allocation3], %s207_s30, %s207_s30, %s208_s5  }
 0x111   :  { %201 = dma.done.wait [#allocation3], 256  }
 0x112   :  { %202 = vsyncadd [#allocation3], 4294967040 }
 0x113   :  { %154 = vsyncpa [#allocation3], 1 }

</bundles_post_ra>
